<compile_context>
chip_gen: v6e
topology: v6e:2x2x1
jax: 0.10.0
libtpu: 0.0.40
codegen_flags: <defaults>
</compile_context>

<pallas_src>
import functools

import jax
import jax.numpy as jnp
from jax.experimental import pallas as pl
from jax.experimental.pallas import tpu as pltpu


def _lambda_shortcut_kernel(x_ref, o_ref, *, c_in, pad):
    # x_ref: (Bt, C, Ho, 2*W)   -- each trailing row is [even-H row | odd-H row]
    # o_ref: (Bt, C + 2*pad, Ho*Wo)
    bt, c, ho, w2 = x_ref.shape
    wo = w2 // 4                       # w2 = 2*W, Wo = W // 2
    hw_out = ho * wo

    # Tiny 0/1 selector built in-registers (no HBM / VMEM operand traffic):
    # column j keeps lane 2*j, i.e. the even-W elements of the even-H half.
    rows = jax.lax.broadcasted_iota(jnp.int32, (w2, wo), 0)
    cols = jax.lax.broadcasted_iota(jnp.int32, (w2, wo), 1)
    sel = (rows == 2 * cols).astype(x_ref.dtype)

    # Stride-2 spatial subsample: one small MXU matmul per block.
    # Exact for any float dtype: each output element is 1.0 * one input element.
    # Leading-dim merge (bt, c, ho) -> bt*c*ho is layout-preserving (free).
    x2 = x_ref[...].reshape(bt * c * ho, w2)
    y = jnp.dot(x2, sel, preferred_element_type=jnp.float32)     # (Bt*C*Ho, Wo)

    # Re-pack to a lane-dense (Ho*Wo) slab so stores are wide instead of
    # Wo-wide masked partial stores. Small XLU/shift work; XLU is idle here.
    y = y.reshape(bt, c, ho, wo).astype(o_ref.dtype)
    if ho > 1:
        y = jnp.concatenate([y[:, :, i, :] for i in range(ho)], axis=-1)
    else:
        y = y.reshape(bt, c, hw_out)                              # (Bt, C, Ho*Wo)

    # Channel zero padding: zero only the pad rows; write data rows once.
    if pad > 0:
        pad_zeros = jnp.zeros((bt, pad, hw_out), dtype=o_ref.dtype)
        o_ref[:, :pad, :] = pad_zeros
        o_ref[:, pad + c_in:, :] = pad_zeros
    o_ref[:, pad:pad + c_in, :] = y


def _pick_batch_block(batch, per_image_bytes, target_bytes=512 * 1024):
    """Largest divisor of `batch` giving ~target_bytes input tiles, while
    keeping >= 2 grid steps when batch >= 2 (so both v7x TCs get work)."""
    cap = max(1, min(batch, target_bytes // max(per_image_bytes, 1)))
    if batch >= 2:
        cap = min(cap, batch // 2)
    bt = 1
    for d in range(1, int(cap) + 1):
        if batch % d == 0:
            bt = d
    return bt


@functools.partial(jax.jit, static_argnums=(1,))
def lambda_layer(x, planes):
    """JAX/Pallas equivalent of
       lambda x: F.pad(x[:, :, ::2, ::2], (0,0,0,0, planes//4, planes//4))."""
    B, C, H, W = x.shape
    assert H % 2 == 0 and W % 2 == 0, "option-A shortcut assumes even H and W"
    Ho, Wo = H // 2, W // 2
    pad = planes // 4
    C_out = C + 2 * pad

    # Free, contiguous reshape: pair adjacent H rows on the lane axis so each
    # trailing row holds [even-H row | odd-H row] of length 2*W.
    x_pairs = x.reshape(B, C, Ho, 2 * W)

    bt = _pick_batch_block(B, C * H * W * x.dtype.itemsize)
    kernel = functools.partial(_lambda_shortcut_kernel, c_in=C, pad=pad)

    out_flat = pl.pallas_call(
        kernel,
        out_shape=jax.ShapeDtypeStruct((B, C_out, Ho * Wo), x.dtype),
        grid=(B // bt,),
        in_specs=[
            pl.BlockSpec((bt, C, Ho, 2 * W), lambda b: (b, 0, 0, 0)),
        ],
        out_specs=pl.BlockSpec((bt, C_out, Ho * Wo), lambda b: (b, 0, 0)),
        compiler_params=pltpu.CompilerParams(dimension_semantics=("parallel",)),
    )(x_pairs)

    # Free minor-dim split back to NCHW.
    return out_flat.reshape(B, C_out, Ho, Wo)


if __name__ == "__main__":
    key = jax.random.PRNGKey(0)
    # Small shapes consistent with the CIFAR ResNet option-A shortcut (scaled
    # down): in_channels=4, planes=8 -> pad planes//4 = 2 each side -> C_out = 8.
    x = jax.random.normal(key, (2, 4, 16, 16), dtype=jnp.float32)
    planes = 8

    out = lambda_layer(x, planes)
    jax.block_until_ready(out)

    # Pure-JAX reference of the lambda's semantics.
    pad = planes // 4
    ref = jnp.pad(x[:, :, ::2, ::2], ((0, 0), (pad, pad), (0, 0), (0, 0)))

    assert out.shape == ref.shape, (out.shape, ref.shape)
    assert out.dtype == ref.dtype, (out.dtype, ref.dtype)
    assert jnp.allclose(out, ref, atol=1e-6), "mismatch vs reference"

    print("KERNEL_OK")
</pallas_src>

<mosaic_0001>
module attributes {stable_mosaic.version = 11 : i64} {
  func.func @_lambda_shortcut_kernel(%arg0: i32, %arg1: memref<1x4x8x32xf32, #tpu.memory_space<vmem>>, %arg2: memref<1x8x64xf32, #tpu.memory_space<vmem>>) attributes {dimension_semantics = [#tpu.dimension_semantics<parallel>], iteration_bounds = array<i64: 2>, scalar_prefetch = 0 : i64, scratch_operands = 0 : i64, tpu.core_type = #tpu.core_type<tc>, window_params = [{transform_indices = @transform_0, window_bounds = array<i64: 1, 4, 8, 32>}, {transform_indices = @transform_1, window_bounds = array<i64: 1, 8, 64>}]} {
    %0 = tpu.iota {dimensions = array<i32: 0>} : vector<32x8xi32>
    %1 = tpu.iota {dimensions = array<i32: 1>} : vector<32x8xi32>
    %c2_i32 = arith.constant 2 : i32
    %2 = vector.broadcast %c2_i32 : i32 to vector<32x8xi32>
    %3 = arith.muli %2, %1 : vector<32x8xi32>
    %4 = arith.cmpi eq, %0, %3 : vector<32x8xi32>
    %5 = arith.extui %4 : vector<32x8xi1> to vector<32x8xi32>
    %6 = arith.sitofp %5 : vector<32x8xi32> to vector<32x8xf32>
    %c0 = arith.constant 0 : index
    %c0_0 = arith.constant 0 : index
    %c0_1 = arith.constant 0 : index
    %c0_2 = arith.constant 0 : index
    %7 = vector.load %arg1[%c0, %c0_0, %c0_1, %c0_2] : memref<1x4x8x32xf32, #tpu.memory_space<vmem>>, vector<1x4x8x32xf32>
    %8 = vector.shape_cast %7 : vector<1x4x8x32xf32> to vector<32x32xf32>
    %cst = arith.constant dense<0.000000e+00> : vector<32x8xf32>
    %9 = tpu.matmul %8, %6, %cst {dimension_numbers = #tpu.dot_dimension_numbers<[1], [0], [0], [1], [0, 0, 1, 1], [], []>} : vector<32x32xf32>, vector<32x8xf32>, vector<32x8xf32> -> vector<32x8xf32>
    %10 = vector.shape_cast %9 : vector<32x8xf32> to vector<1x4x8x8xf32>
    %11 = vector.extract_strided_slice %10 {offsets = [0, 0, 0, 0], sizes = [1, 4, 1, 8], strides = [1, 1, 1, 1]} : vector<1x4x8x8xf32> to vector<1x4x1x8xf32>
    %12 = vector.shape_cast %11 : vector<1x4x1x8xf32> to vector<1x4x8xf32>
    %13 = vector.extract_strided_slice %10 {offsets = [0, 0, 1, 0], sizes = [1, 4, 1, 8], strides = [1, 1, 1, 1]} : vector<1x4x8x8xf32> to vector<1x4x1x8xf32>
    %14 = vector.shape_cast %13 : vector<1x4x1x8xf32> to vector<1x4x8xf32>
    %15 = vector.extract_strided_slice %10 {offsets = [0, 0, 2, 0], sizes = [1, 4, 1, 8], strides = [1, 1, 1, 1]} : vector<1x4x8x8xf32> to vector<1x4x1x8xf32>
    %16 = vector.shape_cast %15 : vector<1x4x1x8xf32> to vector<1x4x8xf32>
    %17 = vector.extract_strided_slice %10 {offsets = [0, 0, 3, 0], sizes = [1, 4, 1, 8], strides = [1, 1, 1, 1]} : vector<1x4x8x8xf32> to vector<1x4x1x8xf32>
    %18 = vector.shape_cast %17 : vector<1x4x1x8xf32> to vector<1x4x8xf32>
    %19 = vector.extract_strided_slice %10 {offsets = [0, 0, 4, 0], sizes = [1, 4, 1, 8], strides = [1, 1, 1, 1]} : vector<1x4x8x8xf32> to vector<1x4x1x8xf32>
    %20 = vector.shape_cast %19 : vector<1x4x1x8xf32> to vector<1x4x8xf32>
    %21 = vector.extract_strided_slice %10 {offsets = [0, 0, 5, 0], sizes = [1, 4, 1, 8], strides = [1, 1, 1, 1]} : vector<1x4x8x8xf32> to vector<1x4x1x8xf32>
    %22 = vector.shape_cast %21 : vector<1x4x1x8xf32> to vector<1x4x8xf32>
    %23 = vector.extract_strided_slice %10 {offsets = [0, 0, 6, 0], sizes = [1, 4, 1, 8], strides = [1, 1, 1, 1]} : vector<1x4x8x8xf32> to vector<1x4x1x8xf32>
    %24 = vector.shape_cast %23 : vector<1x4x1x8xf32> to vector<1x4x8xf32>
    %25 = vector.extract_strided_slice %10 {offsets = [0, 0, 7, 0], sizes = [1, 4, 1, 8], strides = [1, 1, 1, 1]} : vector<1x4x8x8xf32> to vector<1x4x1x8xf32>
    %26 = vector.shape_cast %25 : vector<1x4x1x8xf32> to vector<1x4x8xf32>
    %27 = tpu.concatenate %12, %14, %16, %18, %20, %22, %24, %26 in 2 : vector<1x4x8xf32>, vector<1x4x8xf32>, vector<1x4x8xf32>, vector<1x4x8xf32>, vector<1x4x8xf32>, vector<1x4x8xf32>, vector<1x4x8xf32>, vector<1x4x8xf32> -> vector<1x4x64xf32>
    %cst_3 = arith.constant 0.000000e+00 : f32
    %28 = vector.broadcast %cst_3 : f32 to vector<1x2x64xf32>
    %c0_4 = arith.constant 0 : index
    %c0_5 = arith.constant 0 : index
    %c0_6 = arith.constant 0 : index
    %29 = vector.load %arg2[%c0_4, %c0_5, %c0_6] : memref<1x8x64xf32, #tpu.memory_space<vmem>>, vector<1x2x64xf32>
    tpu.vector_store %arg2[%c0_4, %c0_5, %c0_6], %28 {strides = array<i32>} : memref<1x8x64xf32, #tpu.memory_space<vmem>>, vector<1x2x64xf32>,
    %c0_7 = arith.constant 0 : index
    %c6 = arith.constant 6 : index
    %c0_8 = arith.constant 0 : index
    %30 = vector.load %arg2[%c0_7, %c6, %c0_8] : memref<1x8x64xf32, #tpu.memory_space<vmem>>, vector<1x2x64xf32>
    tpu.vector_store %arg2[%c0_7, %c6, %c0_8], %28 {strides = array<i32>} : memref<1x8x64xf32, #tpu.memory_space<vmem>>, vector<1x2x64xf32>,
    %c0_9 = arith.constant 0 : index
    %c2 = arith.constant 2 : index
    %c0_10 = arith.constant 0 : index
    %31 = vector.load %arg2[%c0_9, %c2, %c0_10] : memref<1x8x64xf32, #tpu.memory_space<vmem>>, vector<1x4x64xf32>
    tpu.vector_store %arg2[%c0_9, %c2, %c0_10], %27 {strides = array<i32>} : memref<1x8x64xf32, #tpu.memory_space<vmem>>, vector<1x4x64xf32>,
    return
  }
  func.func @transform_0(%arg0: i32) -> (i32, i32, i32, i32) {
    %c0_i32 = arith.constant 0 : i32
    %c0_i32_0 = arith.constant 0 : i32
    %c0_i32_1 = arith.constant 0 : i32
    %c0_i32_2 = arith.constant 0 : i32
    return %arg0, %c0_i32, %c0_i32_0, %c0_i32_1 : i32, i32, i32, i32
  }
  func.func @transform_1(%arg0: i32) -> (i32, i32, i32) {
    %c0_i32 = arith.constant 0 : i32
    %c0_i32_0 = arith.constant 0 : i32
    %c0_i32_1 = arith.constant 0 : i32
    return %arg0, %c0_i32, %c0_i32_0 : i32, i32, i32
  }
}

</mosaic_0001>

<bundles_post_ra>
// kernel: lambda_layer.1
= control target key start
LH: loop header
LB: loop body
LE: loop exit
PB: predicated region body
PF: predicated region fallthrough
CT: control target
= control target key end

     0   :  { %s486_s6 = smov 0   ;;  %s571_s0 = inlined_call_operand.vmem [shape: f32[2,4,8,32], index: 0, kind: input, shape index: {}]   ;;  %s572_s1 = inlined_call_operand.vmem [shape: f32[2,8,64], index: 1, kind: output, shape index: {}]  }
   0x1 LB: > { %s389_s7 = sadd.s32 4294967295, %s465_s6   ;;  %p393_p0 = scmp.ge.s32.totalorder %s465_s6, 1  ;;  %s465_s6 = sphi %s486_s6, %s11_s6  }
   0x2   : > { %p87_p1 = scmp.lt.s32.totalorder %s465_s6, 3 }
   0x4   : > { %p88_p2 = pnand %p393_p0, %p87_p1 }
   0x5   : > { %p106_p3 = scmp.lt.s32.totalorder (!%p88_p2), %s389_s7, 1  ;;  %s468_s12 = smov (!%p88_p2), 24  }
   0x6   : > { %91 = sbr.rel (%p88_p2) target bundleno = 355 (0x163), region = 24  ;;  %s469_s13 = smov (!%p88_p2), 8  }
   0x7   : > { %s470_s15 = smov (!%p88_p2), 32   ;;  %s471_s16 = smov (!%p88_p2), 16  }
   0x8   : > { %s473_s20 = smov (!%p88_p2), 48   ;;  %s474_s21 = smov (!%p88_p2), 40  }
   0x9   : > { %s475_s22 = smov (!%p88_p2), 56  }
   0xb   : > { %v115_v0 = vlaneseq  ;;  %s574_s7 = smov (!%p106_p3, %s389_s7), 1  ;;  %v467_v7 = vmov 1.0   ;;  %vm139_vm4 = vcmask 261120   ;;  %vm242_vm5 = vcmask 1041409  }
   0xc   : > { %s411_s8 = sshll.u32 %s574_s7, 5  ;;  %vm245_vm6 = vcmask 1042434   ;;  %vm248_vm7 = vcmask 1043459   ;;  %s396_s14 = sshll.u32 %s574_s7, 3  ;;  %vm331_vm8 = vcmask 517120   ;;  %vm318_vm9 = vcmask 64512  }
   0xd   : > { %v116_v1 = vshrl.u32 %v115_v0, 7  ;;  %v121_v2 = vand.u32 127, %v115_v0  ;;  %s110_s11 = scalar_lea.vmem %s571_s0, %s411_s8  ;;  %s551_s19 = scalar_lea.vmem %s572_s1, %s396_s14  ;;  %vm320_vm10 = vcmask 130048   ;;  %vm322_vm11 = vcmask 195584  }
   0xe   : > { %v135_v8 = vld [vmem:[%s110_s11] sm:$0xff]  ;;  %v137_v9 = vld [vmem:[%s110_s11 + $0x10] sm:$0xff]  ;;  %v136_v10 = vld [vmem:[%s110_s11 + $0x8] sm:$0xff]  ;;  %vm325_vm12 = vcmask 326656   ;;  %vm327_vm13 = vcmask 392192   ;;  %vm329_vm14 = vcmask 457728  }
   0xf   : > { %v119_v3 = vadd.s32 24, %v116_v1  ;;  %v122_v4 = vmul.u32 2, %v121_v2  ;;  %v118_v5 = vadd.s32 16, %v116_v1  ;;  %v117_v6 = vadd.s32 8, %v116_v1  ;;  %v138_v11 = vld [vmem:[%s110_s11 + $0x18] sm:$0xff]  ;;  %428 = vmatprep.mubr.msk.f32.mxu0 %vm139_vm4, %v135_v8  ;;  %431 = vmatprep.mubr.msk.f32.mxu1 %vm139_vm4, %v137_v9 }
  0x10   : > { %vm334_vm15 = vcmask 519168  }
  0x11   : > { %vm126_vm0 = vcmp.eq.s32.totalorder %v119_v3, %v122_v4  ;;  %vm125_vm1 = vcmp.eq.s32.totalorder %v118_v5, %v122_v4  ;;  %vm124_vm2 = vcmp.eq.s32.totalorder %v117_v6, %v122_v4  ;;  %vm123_vm3 = vcmp.eq.s32.totalorder %v116_v1, %v122_v4 }
  0x12   : > { %420 = vmatprep.subr.msk.mxu0 %vm126_vm0, %v467_v7  ;;  %434 = vmatprep.subr.msk.mxu1 %vm126_vm0, %v467_v7  ;;  %v472_v1 = vmov 0.0  }
  0x13   : > { %421 = vmatpush3.msk.msra.mxu0 %vm126_vm0, %v467_v7  ;;  %438 = vmatpush3.msk.msra.mxu1 %vm126_vm0, %v467_v7  ;;  %332 = vst.msk [vmem:[%s551_s19] sm:$0x3] %vm331_vm8, %v472_v1  ;;  %333 = vst.msk [vmem:[%s551_s19 + $0x6] sm:$0x3] %vm331_vm8, %v472_v1 }
  0x14   : > { %422 = vmatprep.subr.msk.mxu0 %vm125_vm1, %v467_v7  ;;  %435 = vmatprep.subr.msk.mxu1 %vm125_vm1, %v467_v7 }
  0x15   : > { %423 = vmatpush3.msk.msra.mxu0 %vm125_vm1, %v467_v7  ;;  %439 = vmatpush3.msk.msra.mxu1 %vm125_vm1, %v467_v7 }
  0x16   : > { %424 = vmatprep.subr.msk.mxu0 %vm124_vm2, %v467_v7  ;;  %436 = vmatprep.subr.msk.mxu1 %vm124_vm2, %v467_v7 }
  0x17   : > { %425 = vmatpush3.msk.msra.mxu0 %vm124_vm2, %v467_v7  ;;  %440 = vmatpush3.msk.msra.mxu1 %vm124_vm2, %v467_v7 }
  0x18   : > { %426 = vmatprep.subr.msk.mxu0 %vm123_vm3, %v467_v7  ;;  %437 = vmatprep.subr.msk.mxu1 %vm123_vm3, %v467_v7 }
  0x19   : > { %427 = vmatpush3.msk.msra.mxu0 %vm123_vm3, %v467_v7  ;;  %441 = vmatpush3.msk.msra.mxu1 %vm123_vm3, %v467_v7 }
  0x1a   : > { %429 = vmatmul.mubr.msk.f32.vlgmr.msra.gmra.mxu0 %vm139_vm4, %v136_v10  ;;  %432 = vmatmul.mubr.msk.f32.vlgmr.msra.gmra.mxu1 %vm139_vm4, %v138_v11 }
  0xda   : > { %v504_v12 = vpop.f32.mrf.mxu0  ;;  %v506_v13 = vpop.f32.mrf.mxu1 }
  0xdb   : > { %v270_v16 = vrot.slane %v504_v12, 2  ;;  %v255_v17 = vrot.slane %v506_v13, 6  ;;  %v279_v18 = vrot.slane %v504_v12, 3  ;;  %v261_v26 = vrot.slane %v504_v12, 1 }
  0xdc   : > { %v218_v14 = vpop.f32.mrf.mxu0  ;;  %v508_v15 = vpop.f32.mrf.mxu1  ;;  %v299_v38 = vrot.slane %v504_v12, 5  ;;  %v283_v39 = vrot.slane %v506_v13, 1  ;;  %v289_v42 = vrot.slane %v504_v12, 4  ;;  %v264_v43 = vrot.slane %v506_v13, 7 }
  0xdd   : > { %v269_v19 = vrot.slane %v218_v14, 3  ;;  %v272_v20 = vrot.slane %v508_v15, 1  ;;  %v251_v21 = vrot.slane %v218_v14, 1  ;;  %v253_v22 = vrot.slane %v508_v15, 7 }
  0xde   : > { %v278_v23 = vrot.slane %v218_v14, 4  ;;  %v281_v24 = vrot.slane %v508_v15, 2  ;;  %v260_v25 = vrot.slane %v218_v14, 2  ;;  %v298_v29 = vrot.slane %v218_v14, 6 }
  0xdf   : > { %v271_v27 = vsel %vm242_vm5, %v270_v16, %v269_v19  ;;  %v252_v28 = vsel %vm242_vm5, %v504_v12, %v251_v21  ;;  %v288_v30 = vrot.slane %v218_v14, 5  ;;  %v301_v41 = vrot.slane %v508_v15, 4 }
  0xe0   : > { %v273_v31 = vsel %vm245_vm6, %v272_v20, %v271_v27  ;;  %v254_v32 = vsel %vm245_vm6, %v253_v22, %v252_v28  ;;  %v280_v33 = vsel %vm242_vm5, %v279_v18, %v278_v23  ;;  %v262_v34 = vsel %vm242_vm5, %v261_v26, %v260_v25 }
  0xe1   : > { %v274_v35 = vsel %vm248_vm7, %v506_v13, %v273_v31  ;;  %v256_v36 = vsel %vm248_vm7, %v255_v17, %v254_v32  ;;  %v282_v37 = vsel %vm245_vm6, %v281_v24, %v280_v33  ;;  %v263_v40 = vsel %vm245_vm6, %v508_v15, %v262_v34 }
  0xe2   : > { %275 = vrot.lane.b32.xlu1 %v274_v35, %s468_s12  ;;  %257 = vrot.lane.b32.xlu0 %v256_v36, %s469_s13  ;;  %v300_v44 = vsel %vm242_vm5, %v299_v38, %v298_v29  ;;  %v291_v45 = vrot.slane %v508_v15, 3  ;;  %v308_v46 = vrot.slane %v218_v14, 7  ;;  %v284_v47 = vsel %vm248_vm7, %v283_v39, %v282_v37 }
  0xe3   : > { %v290_v48 = vsel %vm242_vm5, %v289_v42, %v288_v30  ;;  %v265_v49 = vsel %vm248_vm7, %v264_v43, %v263_v40  ;;  %v309_v50 = vrot.slane %v504_v12, 6  ;;  %v241_v51 = vrot.slane %v504_v12, 7 }
  0xe4   : > { %v244_v52 = vrot.slane %v508_v15, 6  ;;  %v302_v53 = vsel %vm245_vm6, %v301_v41, %v300_v44  ;;  %v303_v54 = vrot.slane %v506_v13, 3  ;;  %v292_v55 = vsel %vm245_vm6, %v291_v45, %v290_v48 }
  0xe5   : > { %v311_v56 = vrot.slane %v508_v15, 5  ;;  %v293_v57 = vrot.slane %v506_v13, 2  ;;  %v310_v58 = vsel %vm242_vm5, %v309_v50, %v308_v46  ;;  %v247_v59 = vrot.slane %v506_v13, 5 }
  0xe6   : > { %285 = vrot.lane.b32.xlu1 %v284_v47, %s470_s15  ;;  %266 = vrot.lane.b32.xlu0 %v265_v49, %s471_s16  ;;  %v243_v60 = vsel %vm242_vm5, %v241_v51, %v218_v14  ;;  %v304_v62 = vsel %vm248_vm7, %v303_v54, %v302_v53  ;;  %v313_v3 = vrot.slane %v506_v13, 4 }
  0xe7   : > { %v246_v61 = vsel %vm245_vm6, %v244_v52, %v243_v60  ;;  %v294_v63 = vsel %vm248_vm7, %v293_v57, %v292_v55  ;;  %v312_v2 = vsel %vm245_vm6, %v311_v56, %v310_v58 }
  0xe8   : > { %v249_v0 = vsel %vm248_vm7, %v247_v59, %v246_v61  ;;  %v314_v4 = vsel %vm248_vm7, %v313_v3, %v312_v2 }
  0xea   : > { %305 = vrot.lane.b32.xlu1 %v304_v62, %s473_s20  ;;  %295 = vrot.lane.b32.xlu0 %v294_v63, %s474_s21 }
  0xee   : > { %315 = vrot.lane.b32.xlu0 %v314_v4, %s475_s22 }
 0x154   : > { %v276_v5 = vpop.permute.xlu1 %275  ;;  %v258_v6 = vpop.permute.xlu0 %257 }
 0x155   : > { %v319_v7 = vsel %vm318_vm9, %v249_v0, %v258_v6 }
 0x158   : > { %v286_v8 = vpop.permute.xlu1 %285  ;;  %v267_v9 = vpop.permute.xlu0 %266 }
 0x159   : > { %v321_v10 = vsel %vm320_vm10, %v319_v7, %v267_v9 }
 0x15a   : > { %v323_v11 = vsel %vm322_vm11, %v321_v10, %v276_v5 }
 0x15b   : > { %v324_v12 = vsel %vm139_vm4, %v323_v11, %v286_v8 }
 0x15c   : > { %v296_v14 = vpop.permute.xlu0 %295  ;;  %v306_v13 = vpop.permute.xlu1 %305 }
 0x15d   : > { %v326_v15 = vsel %vm325_vm12, %v324_v12, %v296_v14 }
 0x15e   : > { %v328_v17 = vsel %vm327_vm13, %v326_v15, %v306_v13 }
 0x160   : > { %v316_v16 = vpop.permute.xlu0 %315 }
 0x161   : > { %v330_v18 = vsel %vm329_vm14, %v328_v17, %v316_v16 }
 0x162   : > { %335 = vst.msk [vmem:[%s551_s19 + $0x2] sm:$0xf] %vm334_vm15, %v330_v18 }
 0x163 PF: > { %s11_s6 = sadd.s32 1, %s465_s6  }
 0x164   : > { %p8_p4 = scmp.ge.s32.totalorder %s11_s6, 4  }
 0x166   :  { %10 = sbr.rel (!%p8_p4) target bundleno = 1 (0x1), region = 54 }

</bundles_post_ra>
